<compile_context>
chip_gen: v5e
topology: v5e:2x2
jax: 0.10.0
libtpu: 0.0.40
codegen_flags: <defaults>
</compile_context>

<pallas_src>
import math

import jax
import jax.numpy as jnp
from jax import lax
from jax.experimental import pallas as pl
from jax.experimental.pallas import tpu as pltpu


_EPS = 1e-6


# ---------------------------------------------------------------------------
# gn_groups: same logic as the PyTorch utility (plain Python, used at setup).
# ---------------------------------------------------------------------------
def gn_groups(proposed, channels, max_groups=8, verbose=False):
    if channels % proposed == 0:
        return proposed
    for candidate in range(proposed, channels):
        if channels % candidate == 0:
            return candidate
    return 1


# ---------------------------------------------------------------------------
# Kernel 1a: per-(batch, channel) sum / sum-of-squares, tiled over N.
# grid = (B, N//TN), N axis innermost ("arbitrary"), output is the resident
# accumulator (same block index across the N axis).
# ---------------------------------------------------------------------------
def _gn_stats_kernel(x_ref, sum_ref, sq_ref):
    ni = pl.program_id(1)

    @pl.when(ni == 0)
    def _():
        sum_ref[...] = jnp.zeros_like(sum_ref)
        sq_ref[...] = jnp.zeros_like(sq_ref)

    x = x_ref[0]                                           # (TN, C) f32
    sum_ref[0] += jnp.sum(x, axis=0, keepdims=True)        # (1, C)
    sq_ref[0] += jnp.sum(x * x, axis=0, keepdims=True)     # (1, C)


# ---------------------------------------------------------------------------
# Kernel 1b: GroupNorm normalize (pre-folded per-(batch,channel) scale/shift)
# + QKV projection on (TN, C) token tiles.  grid = (B, N//TN), both parallel.
# Three (C,C) matmuls, each stored immediately -> no (TN,3C) f32 temporary.
# ---------------------------------------------------------------------------
def _norm_qkv_kernel(x_ref, a_ref, b_ref,
                     wq_ref, wk_ref, wv_ref, bq_ref, bk_ref, bv_ref,
                     q_ref, k_ref, v_ref):
    h = x_ref[0] * a_ref[0] + b_ref[0]                     # (TN, C) f32
    hb = h.astype(jnp.bfloat16)
    # The 1/sqrt(C) attention scale is already folded into Wq / bq.
    q_ref[0] = (jnp.dot(hb, wq_ref[...], preferred_element_type=jnp.float32)
                + bq_ref[...]).astype(jnp.bfloat16)
    k_ref[0] = (jnp.dot(hb, wk_ref[...], preferred_element_type=jnp.float32)
                + bk_ref[...]).astype(jnp.bfloat16)
    v_ref[0] = (jnp.dot(hb, wv_ref[...], preferred_element_type=jnp.float32)
                + bv_ref[...]).astype(jnp.bfloat16)


# ---------------------------------------------------------------------------
# Kernel 2: flash-style attention + output projection + residual.
# grid = (B, N//TQ, N//TKV), KV axis innermost ("arbitrary").
# ---------------------------------------------------------------------------
def _flash_attn_proj_kernel(x_ref, q_ref, k_ref, v_ref, wp_ref, bp_ref, o_ref,
                            m_sc, l_sc, acc_sc):
    ki = pl.program_id(2)

    @pl.when(ki == 0)
    def _():
        m_sc[...] = jnp.full_like(m_sc, -jnp.inf)
        l_sc[...] = jnp.zeros_like(l_sc)
        acc_sc[...] = jnp.zeros_like(acc_sc)

    q = q_ref[0]                       # (TQ, C)  bf16, pre-scaled by C**-0.5
    k = k_ref[0]                       # (TKV, C) bf16
    v = v_ref[0]                       # (TKV, C) bf16

    # q @ k^T with k consumed in its (TKV, C) layout (no explicit transpose).
    s = lax.dot_general(q, k, (((1,), (1,)), ((), ())),
                        preferred_element_type=jnp.float32)          # (TQ, TKV)

    # Online softmax (f32 max/exp/sum: safe on v5e; normalization deferred).
    m_prev = m_sc[...]
    m_new = jnp.maximum(m_prev, jnp.max(s, axis=-1, keepdims=True))
    alpha = jnp.exp(m_prev - m_new)
    p = jnp.exp(s - m_new)
    l_sc[...] = alpha * l_sc[...] + jnp.sum(p, axis=-1, keepdims=True)
    acc_sc[...] = alpha * acc_sc[...] + jnp.dot(
        p.astype(jnp.bfloat16), v, preferred_element_type=jnp.float32)
    m_sc[...] = m_new

    @pl.when(ki == pl.num_programs(2) - 1)
    def _():
        attn = acc_sc[...] * pl.reciprocal(l_sc[...], approx=True)   # (TQ, C)
        proj = jnp.dot(attn.astype(jnp.bfloat16), wp_ref[...],
                       preferred_element_type=jnp.float32) + bp_ref[...]
        o_ref[0] = x_ref[0] + proj


# ---------------------------------------------------------------------------
# Wrapper helpers.
# ---------------------------------------------------------------------------
def _pick_tile(n, target, multiple):
    """Largest divisor of n that is <= target and a multiple of `multiple`,
    else the full n (full-extent blocks are always legal)."""
    t = min(target, n)
    if t >= n:
        return n
    for cand in range(t, multiple - 1, -1):
        if n % cand == 0 and cand % multiple == 0:
            return cand
    return n


def _vmem_cap_bytes():
    try:
        return int(pltpu.get_tpu_info().vmem_capacity_bytes)
    except Exception:
        return 64 << 20   # conservative fallback: v7x per-TensorCore VMEM


def _vmem_limit(est_bytes):
    cap = _vmem_cap_bytes()
    # 2x estimated residency + headroom, floored at the 32 MiB default,
    # capped at 80% of physical (≈102 MiB on v5e/v6e, ≈51 MiB on v7x).
    return int(min(int(cap * 0.8), max(32 << 20, 2 * est_bytes + (4 << 20))))


# ---------------------------------------------------------------------------
# Wrapper: NCHW in/out, tokens-major [B, N, C] inside the kernels.
# ---------------------------------------------------------------------------
def attn_block(x_nchw, params, *, tq=512, tkv=512, tn=512):
    B, C, H, W = x_nchw.shape
    N = H * W
    G = params["num_groups"]
    cpg = C // G
    scale = float(C) ** (-0.5)

    # NCHW -> (B, N, C): channels on the 128-lane axis.
    x = jnp.transpose(x_nchw, (0, 2, 3, 1)).reshape(B, N, C).astype(jnp.float32)

    tn_ = _pick_tile(N, tn, 8)       # token tile for GroupNorm/QKV
    tq_ = _pick_tile(N, tq, 8)       # query tile (sublane axis of logits)
    tkv_ = _pick_tile(N, tkv, 128)   # kv tile (lane axis of logits): 128-dense
    nn_, nq, nkv = N // tn_, N // tq_, N // tkv_

    # -------- kernel 1a: per-(batch, channel) sum / sum-of-squares ---------
    est1a = 2 * tn_ * C * 4 + 4 * C * 4
    sums, sqs = pl.pallas_call(
        _gn_stats_kernel,
        out_shape=(jax.ShapeDtypeStruct((B, 1, C), jnp.float32),) * 2,
        grid_spec=pltpu.PrefetchScalarGridSpec(
            num_scalar_prefetch=0,
            grid=(B, nn_),
            in_specs=[pl.BlockSpec((1, tn_, C), lambda b, ni: (b, ni, 0))],
            out_specs=(pl.BlockSpec((1, 1, C), lambda b, ni: (b, 0, 0)),) * 2,
        ),
        compiler_params=pltpu.CompilerParams(
            dimension_semantics=("parallel", "arbitrary"),
            vmem_limit_bytes=_vmem_limit(est1a)),
    )(x)

    # Tiny (B, C)-sized math: fold group mean/rstd + GN affine into per
    # (batch, channel) scale a and shift b  (h = x*a + b).
    cnt = float(N * cpg)
    g_sum = jnp.sum(sums.reshape(B, G, cpg), axis=-1)          # (B, G)
    g_sq = jnp.sum(sqs.reshape(B, G, cpg), axis=-1)            # (B, G)
    g_mean = g_sum / cnt
    g_var = jnp.maximum(g_sq / cnt - g_mean * g_mean, 0.0)
    g_rstd = lax.rsqrt(g_var + _EPS)
    mean_c = jnp.repeat(g_mean, cpg, axis=1).reshape(B, 1, C)
    rstd_c = jnp.repeat(g_rstd, cpg, axis=1).reshape(B, 1, C)
    gamma = params["gamma"].reshape(1, 1, C).astype(jnp.float32)
    beta = params["beta"].reshape(1, 1, C).astype(jnp.float32)
    a_bc = (rstd_c * gamma).astype(jnp.float32)                # (B, 1, C)
    b_bc = (beta - mean_c * rstd_c * gamma).astype(jnp.float32)

    # 1x1 conv weights (Cout, Cin, 1, 1) -> per-token linear W^T (Cin, Cout).
    # Fold the attention scale into Wq / bq.
    wq_t = (params["wq"].reshape(C, C).T * scale).astype(jnp.bfloat16)
    wk_t = params["wk"].reshape(C, C).T.astype(jnp.bfloat16)
    wv_t = params["wv"].reshape(C, C).T.astype(jnp.bfloat16)
    bq = (params["bq"].reshape(1, C) * scale).astype(jnp.float32)
    bk = params["bk"].reshape(1, C).astype(jnp.float32)
    bv = params["bv"].reshape(1, C).astype(jnp.float32)
    wp_t = params["wp"].reshape(C, C).T.astype(jnp.bfloat16)
    bp = params["bp"].reshape(1, C).astype(jnp.float32)

    # -------- kernel 1b: normalize + QKV projection, tiled over N ----------
    est1b = (2 * tn_ * C * 4                    # x blocks (double-buffered)
             + 4 * C * 4                        # a, b blocks
             + 2 * 3 * (C * C * 2 + C * 4)      # weights + biases
             + 2 * 3 * tn_ * C * 2              # q/k/v output blocks (bf16)
             + tn_ * C * (4 + 2 + 4))           # h, h_bf16, one f32 matmul temp
    qkv_shape = jax.ShapeDtypeStruct((B, N, C), jnp.bfloat16)
    q, k, v = pl.pallas_call(
        _norm_qkv_kernel,
        out_shape=(qkv_shape,) * 3,
        grid_spec=pltpu.PrefetchScalarGridSpec(
            num_scalar_prefetch=0,
            grid=(B, nn_),
            in_specs=[
                pl.BlockSpec((1, tn_, C), lambda b, ni: (b, ni, 0)),   # x
                pl.BlockSpec((1, 1, C), lambda b, ni: (b, 0, 0)),      # a
                pl.BlockSpec((1, 1, C), lambda b, ni: (b, 0, 0)),      # b
                pl.BlockSpec((C, C), lambda b, ni: (0, 0)),            # Wq^T
                pl.BlockSpec((C, C), lambda b, ni: (0, 0)),            # Wk^T
                pl.BlockSpec((C, C), lambda b, ni: (0, 0)),            # Wv^T
                pl.BlockSpec((1, C), lambda b, ni: (0, 0)),            # bq
                pl.BlockSpec((1, C), lambda b, ni: (0, 0)),            # bk
                pl.BlockSpec((1, C), lambda b, ni: (0, 0)),            # bv
            ],
            out_specs=(pl.BlockSpec((1, tn_, C), lambda b, ni: (b, ni, 0)),) * 3,
        ),
        compiler_params=pltpu.CompilerParams(
            dimension_semantics=("parallel", "parallel"),
            vmem_limit_bytes=_vmem_limit(est1b)),
    )(x, a_bc, b_bc, wq_t, wk_t, wv_t, bq, bk, bv)

    # -------- kernel 2: flash attention + output proj + residual -----------
    est2 = (2 * tq_ * C * (4 + 2 + 4)    # x, q, out blocks (double-buffered)
            + 2 * tkv_ * C * (2 + 2)     # k, v blocks
            + 2 * (C * C * 2 + C * 4)    # Wp, bp
            + tq_ * (C + 2) * 4          # scratch m/l/acc
            + tq_ * tkv_ * 10)           # s (f32), p (f32 + bf16 cast)
    out = pl.pallas_call(
        _flash_attn_proj_kernel,
        out_shape=jax.ShapeDtypeStruct((B, N, C), jnp.float32),
        grid_spec=pltpu.PrefetchScalarGridSpec(
            num_scalar_prefetch=0,
            grid=(B, nq, nkv),
            in_specs=[
                pl.BlockSpec((1, tq_, C), lambda b, qi, ki: (b, qi, 0)),   # x
                pl.BlockSpec((1, tq_, C), lambda b, qi, ki: (b, qi, 0)),   # q
                pl.BlockSpec((1, tkv_, C), lambda b, qi, ki: (b, ki, 0)),  # k
                pl.BlockSpec((1, tkv_, C), lambda b, qi, ki: (b, ki, 0)),  # v
                pl.BlockSpec((C, C), lambda b, qi, ki: (0, 0)),            # Wp^T
                pl.BlockSpec((1, C), lambda b, qi, ki: (0, 0)),            # bp
            ],
            out_specs=pl.BlockSpec((1, tq_, C), lambda b, qi, ki: (b, qi, 0)),
            scratch_shapes=[
                pltpu.VMEM((tq_, 1), jnp.float32),    # running row max
                pltpu.VMEM((tq_, 1), jnp.float32),    # running denominator
                pltpu.VMEM((tq_, C), jnp.float32),    # output accumulator
            ],
        ),
        compiler_params=pltpu.CompilerParams(
            dimension_semantics=("parallel", "parallel", "arbitrary"),
            vmem_limit_bytes=_vmem_limit(est2)),
    )(x, q, k, v, wp_t, bp)

    # (B, N, C) -> NCHW
    return jnp.transpose(out.reshape(B, H, W, C), (0, 3, 1, 2))


# ---------------------------------------------------------------------------
# Pure-JAX reference (mirrors the PyTorch forward) for correctness checking.
# ---------------------------------------------------------------------------
def attn_block_ref(x_nchw, params):
    B, C, H, W = x_nchw.shape
    N = H * W
    G = params["num_groups"]
    x = x_nchw.astype(jnp.float32)

    xg = x.reshape(B, G, C // G * N)
    mean = jnp.mean(xg, axis=-1, keepdims=True)
    var = jnp.mean((xg - mean) ** 2, axis=-1, keepdims=True)
    hn = ((xg - mean) / jnp.sqrt(var + _EPS)).reshape(B, C, H, W)
    hn = hn * params["gamma"].reshape(1, C, 1, 1) + params["beta"].reshape(1, C, 1, 1)

    def conv1x1(h, w, b):
        return jnp.einsum("bchw,oc->bohw", h, w.reshape(C, C)) + b.reshape(1, C, 1, 1)

    q = conv1x1(hn, params["wq"], params["bq"]).reshape(B, C, N)
    k = conv1x1(hn, params["wk"], params["bk"]).reshape(B, C, N)
    v = conv1x1(hn, params["wv"], params["bv"]).reshape(B, C, N)

    w_ = jnp.einsum("bci,bcj->bij", q, k) * (C ** -0.5)
    w_ = jax.nn.softmax(w_, axis=2)
    h_ = jnp.einsum("bcj,bij->bci", v, w_).reshape(B, C, H, W)
    h_ = conv1x1(h_, params["wp"], params["bp"])
    return x + h_


# ---------------------------------------------------------------------------
# Deterministic parameter init (shapes from AttnBlock.__init__).
# ---------------------------------------------------------------------------
def init_params(key, C):
    ks = jax.random.split(key, 8)
    scale = 1.0 / math.sqrt(C)
    p = {
        "num_groups": gn_groups(32, C),
        "gamma": jnp.ones((C,), jnp.float32),
        "beta": jnp.zeros((C,), jnp.float32),
    }
    names = ["q", "k", "v", "p"]
    for i, n in enumerate(names):
        p["w" + n] = jax.random.uniform(ks[2 * i], (C, C, 1, 1), jnp.float32,
                                        -scale, scale)
        p["b" + n] = jax.random.uniform(ks[2 * i + 1], (C,), jnp.float32,
                                        -scale, scale)
    return p


if __name__ == "__main__":
    key = jax.random.PRNGKey(0)
    kx, kp = jax.random.split(key)

    # Small shapes; N = 256 with 128-sized tiles exercises multi-tile paths
    # in all three kernels (2 N-tiles, 2 query tiles x 2 kv tiles).
    B, C, H, W = 2, 32, 16, 16
    x = jax.random.normal(kx, (B, C, H, W), jnp.float32)
    params = init_params(kp, C)

    out = jax.block_until_ready(attn_block(x, params, tq=128, tkv=128, tn=128))
    ref = jax.block_until_ready(attn_block_ref(x, params))

    assert out.shape == x.shape and out.dtype == jnp.float32
    max_err = float(jnp.max(jnp.abs(out - ref)))
    # bf16 MXU inputs (f32 accumulation) -> looser tolerance than pure f32.
    assert jnp.allclose(out, ref, atol=2e-2, rtol=2e-2), max_err
    print("KERNEL_OK")
</pallas_src>

<mosaic_0001>
module attributes {stable_mosaic.version = 11 : i64} {
  func.func @_gn_stats_kernel(%arg0: i32, %arg1: i32, %arg2: memref<1x128x32xf32, #tpu.memory_space<vmem>>, %arg3: memref<1x1x32xf32, #tpu.memory_space<vmem>>, %arg4: memref<1x1x32xf32, #tpu.memory_space<vmem>>) attributes {dimension_semantics = [#tpu.dimension_semantics<parallel>, #tpu.dimension_semantics<arbitrary>], iteration_bounds = array<i64: 2, 2>, scalar_prefetch = 0 : i64, scratch_operands = 0 : i64, tpu.core_type = #tpu.core_type<tc>, window_params = [{transform_indices = @transform_0, window_bounds = array<i64: 1, 128, 32>}, {transform_indices = @transform_1, window_bounds = array<i64: 1, 1, 32>}, {transform_indices = @transform_2, window_bounds = array<i64: 1, 1, 32>}]} {
    %c0_i32 = arith.constant 0 : i32
    %0 = arith.cmpi eq, %arg1, %c0_i32 : i32
    %1 = arith.extui %0 : i1 to i32
    %c0_i32_0 = arith.constant 0 : i32
    %2 = arith.cmpi ne, %1, %c0_i32_0 : i32
    scf.if %2 {
      %cst_16 = arith.constant 0.000000e+00 : f32
      %22 = vector.broadcast %cst_16 : f32 to vector<1x1x32xf32>
      %c0_17 = arith.constant 0 : index
      %c0_18 = arith.constant 0 : index
      %c0_19 = arith.constant 0 : index
      %23 = vector.load %arg3[%c0_17, %c0_18, %c0_19] : memref<1x1x32xf32, #tpu.memory_space<vmem>>, vector<1x1x32xf32>
      tpu.vector_store %arg3[%c0_17, %c0_18, %c0_19], %22 {strides = array<i32>} : memref<1x1x32xf32, #tpu.memory_space<vmem>>, vector<1x1x32xf32>,
      %cst_20 = arith.constant 0.000000e+00 : f32
      %24 = vector.broadcast %cst_20 : f32 to vector<1x1x32xf32>
      %c0_21 = arith.constant 0 : index
      %c0_22 = arith.constant 0 : index
      %c0_23 = arith.constant 0 : index
      %25 = vector.load %arg4[%c0_21, %c0_22, %c0_23] : memref<1x1x32xf32, #tpu.memory_space<vmem>>, vector<1x1x32xf32>
      tpu.vector_store %arg4[%c0_21, %c0_22, %c0_23], %24 {strides = array<i32>} : memref<1x1x32xf32, #tpu.memory_space<vmem>>, vector<1x1x32xf32>,
    } else {
    }
    %c0 = arith.constant 0 : index
    %c0_1 = arith.constant 0 : index
    %c0_2 = arith.constant 0 : index
    %3 = vector.load %arg2[%c0, %c0_1, %c0_2] : memref<1x128x32xf32, #tpu.memory_space<vmem>>, vector<1x128x32xf32>
    %4 = vector.shape_cast %3 : vector<1x128x32xf32> to vector<128x32xf32>
    %c0_3 = arith.constant 0 : index
    %c0_4 = arith.constant 0 : index
    %c0_5 = arith.constant 0 : index
    %5 = vector.load %arg3[%c0_3, %c0_4, %c0_5] : memref<1x1x32xf32, #tpu.memory_space<vmem>>, vector<1x1x32xf32>
    %6 = vector.shape_cast %5 : vector<1x1x32xf32> to vector<1x32xf32>
    %cst = arith.constant dense<0.000000e+00> : vector<32xf32>
    %7 = vector.multi_reduction <add>, %4, %cst [0] : vector<128x32xf32> to vector<32xf32>
    %8 = vector.shape_cast %7 : vector<32xf32> to vector<1x32xf32>
    %9 = arith.addf %6, %8 : vector<1x32xf32>
    %c0_6 = arith.constant 0 : index
    %c0_7 = arith.constant 0 : index
    %c0_8 = arith.constant 0 : index
    %10 = vector.load %arg3[%c0_6, %c0_7, %c0_8] : memref<1x1x32xf32, #tpu.memory_space<vmem>>, vector<1x1x32xf32>
    %11 = vector.shape_cast %10 : vector<1x1x32xf32> to vector<1x32xf32>
    %12 = vector.shape_cast %9 : vector<1x32xf32> to vector<1x1x32xf32>
    tpu.vector_store %arg3[%c0_6, %c0_7, %c0_8], %12 {strides = array<i32>} : memref<1x1x32xf32, #tpu.memory_space<vmem>>, vector<1x1x32xf32>,
    %c0_9 = arith.constant 0 : index
    %c0_10 = arith.constant 0 : index
    %c0_11 = arith.constant 0 : index
    %13 = vector.load %arg4[%c0_9, %c0_10, %c0_11] : memref<1x1x32xf32, #tpu.memory_space<vmem>>, vector<1x1x32xf32>
    %14 = vector.shape_cast %13 : vector<1x1x32xf32> to vector<1x32xf32>
    %15 = arith.mulf %4, %4 : vector<128x32xf32>
    %cst_12 = arith.constant dense<0.000000e+00> : vector<32xf32>
    %16 = vector.multi_reduction <add>, %15, %cst_12 [0] : vector<128x32xf32> to vector<32xf32>
    %17 = vector.shape_cast %16 : vector<32xf32> to vector<1x32xf32>
    %18 = arith.addf %14, %17 : vector<1x32xf32>
    %c0_13 = arith.constant 0 : index
    %c0_14 = arith.constant 0 : index
    %c0_15 = arith.constant 0 : index
    %19 = vector.load %arg4[%c0_13, %c0_14, %c0_15] : memref<1x1x32xf32, #tpu.memory_space<vmem>>, vector<1x1x32xf32>
    %20 = vector.shape_cast %19 : vector<1x1x32xf32> to vector<1x32xf32>
    %21 = vector.shape_cast %18 : vector<1x32xf32> to vector<1x1x32xf32>
    tpu.vector_store %arg4[%c0_13, %c0_14, %c0_15], %21 {strides = array<i32>} : memref<1x1x32xf32, #tpu.memory_space<vmem>>, vector<1x1x32xf32>,
    return
  }
  func.func @transform_0(%arg0: i32, %arg1: i32) -> (i32, i32, i32) {
    %c0_i32 = arith.constant 0 : i32
    %c0_i32_0 = arith.constant 0 : i32
    return %arg0, %arg1, %c0_i32 : i32, i32, i32
  }
  func.func @transform_1(%arg0: i32, %arg1: i32) -> (i32, i32, i32) {
    %c0_i32 = arith.constant 0 : i32
    %c0_i32_0 = arith.constant 0 : i32
    %c0_i32_1 = arith.constant 0 : i32
    return %arg0, %c0_i32, %c0_i32_0 : i32, i32, i32
  }
  func.func @transform_2(%arg0: i32, %arg1: i32) -> (i32, i32, i32) {
    %c0_i32 = arith.constant 0 : i32
    %c0_i32_0 = arith.constant 0 : i32
    %c0_i32_1 = arith.constant 0 : i32
    return %arg0, %c0_i32, %c0_i32_0 : i32, i32, i32
  }
}

</mosaic_0001>

<bundles_post_ra>
// kernel: tpu_custom_call.1
= control target key start
LH: loop header
LB: loop body
LE: loop exit
PB: predicated region body
PF: predicated region fallthrough
CT: control target
= control target key end

     0   :  { %8 = vsyncpa [#allocation3], 0  ;;  %s865_s0 = inlined_call_operand.vmem [shape: f32[2,256,32], index: 0, kind: input, shape index: {}]   ;;  %s866_s1 = inlined_call_operand.hbm [shape: f32[2,1,32], index: 1, kind: output, shape index: {0}]   ;;  %s867_s2 = inlined_call_operand.hbm [shape: f32[2,1,32], index: 2, kind: output, shape index: {1}]  }
   0x1   :  { %10 = vsyncpa [#allocation3 + $0x1], 0 }
   0x2   :  { %11 = vsyncpa [#allocation5], 0 }
   0x3   :  { %13 = vsyncpa [#allocation5 + $0x1], 0  ;;  %s662_s9 = smov 0   ;;  %s664_s10 = smov 0  }
   0x4   :  { %s666_s11 = smov 0   ;;  %s668_s12 = smov 0  }
   0x5   :  { %s670_s13 = smov 0   ;;  %s672_s14 = smov 0  }
   0x6   :  { %s674_s15 = smov 0   ;;  %s676_s16 = smov 0  }
   0x7 LB: > { %s430_s17 = sadd.s32 4294967295, %s644_s16   ;;  %s431_s18 = sadd.s32 4294967294, %s644_s16   ;;  %s644_s16 = sphi %s676_s16, %s19_s16   ;;  %s640_s15 = sphi %s674_s15, %s876_s15   ;;  %s636_s14 = sphi %s672_s14, %s875_s14   ;;  %s632_s13 = sphi %s670_s13, %s874_s13   ;;  %s628_s12 = sphi %s668_s12, %s873_s12   ;;  %s624_s11 = sphi %s666_s11, %s872_s11   ;;  %s620_s10 = sphi %s664_s10, %s871_s10   ;;  %s616_s9 = sphi %s662_s9, %s870_s9  }
   0x8   : > { %s28_s19 = sadd.s32 1, %s636_s14  ;;  %s31_s20 = sadd.s32 1, %s640_s15 }
   0x9   : > { %p29_p0 = scmp.ge.s32.totalorder %s28_s19, 2  ;;  %p76_p1 = scmp.ne.s32.totalorder %s624_s11, %s620_s10 }
   0xa   : > { %p77_p2 = scmp.eq.s32.totalorder %s430_s17, 3  ;;  %p82_p4 = scmp.ne.s32.totalorder %s620_s10, %s616_s9 }
   0xb   : > { %s878_s19 = smov (%p29_p0, %s28_s19), 0  ;;  %s880_s20 = smov (!%p29_p0, %s31_s20), %s640_s15 }
   0xc   : > { %p711_p3 = por %p77_p2, %p76_p1  ;;  %p33_p5 = scmp.ge.s32.totalorder %s880_s20, 2 }
   0xd   : > { %p83_p6 = scmp.eq.s32.totalorder %s431_s18, 3  ;;  %p434_p7 = scmp.ge.s32.totalorder %s644_s16, 1 }
   0xe   : > { %p140_p8 = scmp.lt.s32.totalorder %s644_s16, 5  ;;  %s882_s20 = smov (%p33_p5, %s880_s20), 0 }
   0xf   : > { %p721_p9 = por %p83_p6, %p82_p4  ;;  %s63_s23 = ssub.s32 %s640_s15, %s882_s20 }
  0x10   : > { %p141_p10 = pnand %p434_p7, %p140_p8  ;;  %s66_s24 = sadd.s32 1, %s624_s11 }
  0x11   : > { %p64_p11 = scmp.eq.s32.totalorder %s63_s23, 0  ;;  %s732_s26 = sand.u32 (!%p141_p10), 1, %s620_s10  }
  0x12   : > { %144 = sbr.rel (%p141_p10) target bundleno = 94 (0x5e), region = 24  ;;  %s435_s27 = sshll.u32 (!%p141_p10), %s628_s12, 4 }
  0x13   : > { %s729_s25 = scalar_select %p64_p11, %s624_s11, %s66_s24  }
  0x14   : > { %p170_p12 = scmp.lt.s32.totalorder (!%p141_p10), %s632_s13, 1  ;;  %p172_p13 = scmp.lt.s32.totalorder (!%p141_p10), %s435_s27, 31 }
  0x15   : > { %s743_s7 = scalar_lea.vmem (!%p141_p10), [#allocation2], %s732_s26  ;;  %s746_s8 = scalar_lea.vmem (!%p141_p10), [#allocation4], %s732_s26 }
  0x16   : > { %p438_p0 = scmp.ne.s32.totalorder (!%p141_p10), %s628_s12, 0 }
  0x17   : > { %s171_s28 = scalar_select %p170_p12, %s632_s13, 1 }
  0x18   : > { %s884_s27 = smov (!%p172_p13, %s435_s27), 31  ;;  %182 = sbr.rel (%p438_p0) target bundleno = 32 (0x20), region = 28 }
  0x19   : > { %s436_s29 = sshll.u32 %s171_s28, 5 }
  0x1a   : > { %s175_s30 = sadd.s32 %s436_s29, %s884_s27 }
  0x1b   : > { %s437_s3 = sshll.u32 %s175_s30, 3 }
  0x1c   : > { %s740_s6 = scalar_lea.vmem %s865_s0, %s437_s3 }
  0x1d   : > { %vm183_vm0 = vcmask 253952   ;;  %v646_v0 = vmov 0.0  }
  0x1e   : > { %184 = vst.msk [vmem:[%s743_s7] sm:$0x1] %vm183_vm0, %v646_v0 }
  0x1f   : > { %185 = vst.msk [vmem:[%s746_s8] sm:$0x1] %vm183_vm0, %v646_v0 }
  0x20 PF: > { %v186_v1 = vld [vmem:[%s740_s6] sm:$0xff]  ;;  %v187_v2 = vld [vmem:[%s740_s6 + $0x8] sm:$0xff]  ;;  %v188_v3 = vld [vmem:[%s740_s6 + $0x10] sm:$0xff]  ;;  %vm203_vm1 = vcmask 261120   ;;  %s313_s18 = scalar_lea.hbm %s866_s1, %s632_s13  ;;  %s315_s23 = sshll.u32 %s743_s7, 4  ;;  %vm242_vm2 = vcmask 253952   ;;  %s316_s23 = int_to_ptr.vmem [resolvable:$true] %s315_s23 }
  0x21   : > { %v204_v4 = vsel %vm203_vm1, %v186_v1, 0.0  ;;  %v205_v5 = vsel %vm203_vm1, %v187_v2, 0.0  ;;  %v207_v6 = vsel %vm203_vm1, %v188_v3, 0.0  ;;  %v189_v7 = vld [vmem:[%s740_s6 + $0x18] sm:$0xff]  ;;  %v190_v10 = vld [vmem:[%s740_s6 + $0x20] sm:$0xff]  ;;  %v191_v13 = vld [vmem:[%s740_s6 + $0x28] sm:$0xff]  ;;  %v245_v15 = vmul.f32 %v186_v1, %v186_v1  ;;  %s326_s29 = scalar_lea.hbm %s867_s2, %s632_s13 }
  0x22   : > { %v206_v8 = vadd.f32 %v205_v5, %v204_v4  ;;  %v209_v9 = vsel %vm203_vm1, %v189_v7, 0.0  ;;  %v211_v12 = vsel %vm203_vm1, %v190_v10, 0.0  ;;  %v246_v16 = vmul.f32 %v187_v2, %v187_v2  ;;  %v192_v19 = vld [vmem:[%s740_s6 + $0x30] sm:$0xff]  ;;  %v193_v24 = vld [vmem:[%s740_s6 + $0x38] sm:$0xff]  ;;  %v194_v31 = vld [vmem:[%s740_s6 + $0x40] sm:$0xff]  ;;  %s317_s24 = sshll.u32 %s313_s18, 4  ;;  %s318_s24 = int_to_ptr.hbm [resolvable:$true] %s317_s24 }
  0x23   : > { %v247_v17 = vmul.f32 %v188_v3, %v188_v3  ;;  %v213_v18 = vsel %vm203_vm1, %v191_v13, 0.0  ;;  %v248_v21 = vmul.f32 %v189_v7, %v189_v7  ;;  %v215_v22 = vsel %vm203_vm1, %v192_v19, 0.0  ;;  %v195_v37 = vld [vmem:[%s740_s6 + $0x48] sm:$0xff]  ;;  %v196_v43 = vld [vmem:[%s740_s6 + $0x50] sm:$0xff]  ;;  %v197_v49 = vld [vmem:[%s740_s6 + $0x58] sm:$0xff]  ;;  %s301_s30 = scalar_lea.sflag [#allocation3], %s732_s26 }
  0x24   : > { %v208_v11 = vadd.f32 %v207_v6, %v206_v8  ;;  %v249_v23 = vmul.f32 %v190_v10, %v190_v10  ;;  %v261_v26 = vsel %vm203_vm1, %v245_v15, 0.0  ;;  %v262_v27 = vsel %vm203_vm1, %v246_v16, 0.0  ;;  %v198_v55 = vld [vmem:[%s740_s6 + $0x60] sm:$0xff]  ;;  %v199_v61 = vld [vmem:[%s740_s6 + $0x68] sm:$0xff]  ;;  %v200_v3 = vld [vmem:[%s740_s6 + $0x70] sm:$0xff]  ;;  %s532_s3 = sshra.s32 %s318_s24, 4  ;;  %s533_s3 = int_to_ptr.hbm [resolvable:$true] %s532_s3 }
  0x25   : > { %v264_v28 = vsel %vm203_vm1, %v247_v17, 0.0  ;;  %v217_v29 = vsel %vm203_vm1, %v193_v24, 0.0  ;;  %v263_v30 = vadd.f32 %v262_v27, %v261_v26  ;;  %v250_v33 = vmul.f32 %v191_v13, %v191_v13  ;;  %s534_s4 = scalar_lea.hbm %s533_s3, 1  ;;  %s538_s12 = scalar_lea.hbm %s866_s1, 2 }
  0x26   : > { %v210_v14 = vadd.f32 %v209_v9, %v208_v11  ;;  %v266_v34 = vsel %vm203_vm1, %v248_v21, 0.0  ;;  %v219_v35 = vsel %vm203_vm1, %v194_v31, 0.0  ;;  %v251_v39 = vmul.f32 %v192_v19, %v192_v19  ;;  %v201_v9 = vld [vmem:[%s740_s6 + $0x78] sm:$0xff]  ;;  %p535_p1 = scmp.ne.s32.totalorder %s533_s3, %s534_s4  ;;  %p539_p5 = scmp.lt.s32.totalorder %s533_s3, %s866_s1 }
  0x27   : > { %v265_v36 = vadd.f32 %v264_v28, %v263_v30  ;;  %v268_v40 = vsel %vm203_vm1, %v249_v23, 0.0  ;;  %v221_v41 = vsel %vm203_vm1, %v195_v37, 0.0  ;;  %v252_v45 = vmul.f32 %v193_v24, %v193_v24  ;;  %p540_p6 = scmp.lt.s32.totalorder %s538_s12, %s534_s4 }
  0x28   : > { %v212_v20 = vadd.f32 %v211_v12, %v210_v14  ;;  %v270_v46 = vsel %vm203_vm1, %v250_v33, 0.0  ;;  %v223_v47 = vsel %vm203_vm1, %v196_v43, 0.0  ;;  %v253_v51 = vmul.f32 %v194_v31, %v194_v31  ;;  %p536_p2 = pnand %p535_p1, %p711_p3 }
  0x29   : > { %v267_v42 = vadd.f32 %v266_v34, %v265_v36  ;;  %v272_v52 = vsel %vm203_vm1, %v251_v39, 0.0  ;;  %v225_v53 = vsel %vm203_vm1, %v197_v49, 0.0  ;;  %v254_v57 = vmul.f32 %v195_v37, %v195_v37  ;;  %v202_v36 = vld [vmem:[%s743_s7] sm:$0x1]  ;;  %p541_p7 = por %p540_p6, %p539_p5 }
  0x2a   : > { %v214_v25 = vadd.f32 %v213_v18, %v212_v20  ;;  %v274_v58 = vsel %vm203_vm1, %v252_v45, 0.0  ;;  %v227_v59 = vsel %vm203_vm1, %v198_v55, 0.0  ;;  %v255_v63 = vmul.f32 %v196_v43, %v196_v43  ;;  %p537_p4 = pneg %p536_p2 }
  0x2b   : > { %v269_v48 = vadd.f32 %v268_v40, %v267_v42  ;;  %v276_v0 = vsel %vm203_vm1, %v253_v51, 0.0  ;;  %v229_v1 = vsel %vm203_vm1, %v199_v61, 0.0  ;;  %v256_v5 = vmul.f32 %v197_v49, %v197_v49 }
  0x2c   : > { %v216_v32 = vadd.f32 %v215_v22, %v214_v25  ;;  %v278_v6 = vsel %vm203_vm1, %v254_v57, 0.0  ;;  %v231_v7 = vsel %vm203_vm1, %v200_v3, 0.0  ;;  %v257_v11 = vmul.f32 %v198_v55, %v198_v55  ;;  %p542_p8 = pnand %p541_p7, %p537_p4 }
  0x2d   : > { %v271_v54 = vadd.f32 %v270_v46, %v269_v48  ;;  %v280_v12 = vsel %vm203_vm1, %v255_v63, 0.0  ;;  %v233_v13 = vsel %vm203_vm1, %v201_v9, 0.0  ;;  %v258_v16 = vmul.f32 %v199_v61, %v199_v61 }
  0x2e   : > { %v218_v38 = vadd.f32 %v217_v29, %v216_v32  ;;  %v282_v17 = vsel %vm203_vm1, %v256_v5, 0.0  ;;  %v259_v20 = vmul.f32 %v200_v3, %v200_v3  ;;  %v284_v21 = vsel %vm203_vm1, %v257_v11, 0.0 }
  0x2f   : > { %v273_v60 = vadd.f32 %v272_v52, %v271_v54  ;;  %v260_v24 = vmul.f32 %v201_v9, %v201_v9  ;;  %v286_v25 = vsel %vm203_vm1, %v258_v16, 0.0 }
  0x30   : > { %v220_v44 = vadd.f32 %v219_v35, %v218_v38  ;;  %v288_v28 = vsel %vm203_vm1, %v259_v20, 0.0 }
  0x31   : > { %v275_v2 = vadd.f32 %v274_v58, %v273_v60  ;;  %v290_v31 = vsel %vm203_vm1, %v260_v24, 0.0 }
  0x32   : > { %v222_v50 = vadd.f32 %v221_v41, %v220_v44 }
  0x33   : > { %v277_v8 = vadd.f32 %v276_v0, %v275_v2 }
  0x34   : > { %v224_v56 = vadd.f32 %v223_v47, %v222_v50 }
  0x35   : > { %v279_v14 = vadd.f32 %v278_v6, %v277_v8 }
  0x36   : > { %v226_v62 = vadd.f32 %v225_v53, %v224_v56 }
  0x37   : > { %v281_v18 = vadd.f32 %v280_v12, %v279_v14 }
  0x38   : > { %v228_v4 = vadd.f32 %v227_v59, %v226_v62 }
  0x39   : > { %v283_v22 = vadd.f32 %v282_v17, %v281_v18 }
  0x3a   : > { %v230_v10 = vadd.f32 %v229_v1, %v228_v4 }
  0x3b   : > { %v285_v26 = vadd.f32 %v284_v21, %v283_v22 }
  0x3c   : > { %v232_v15 = vadd.f32 %v231_v7, %v230_v10 }
  0x3d   : > { %v287_v29 = vadd.f32 %v286_v25, %v285_v26 }
  0x3e   : > { %v234_v19 = vadd.f32 %v233_v13, %v232_v15 }
  0x3f   : > { %v289_v32 = vadd.f32 %v288_v28, %v287_v29 }
  0x40   : > { %v235_v23 = vrot.slane %v234_v19, 4 }
  0x41   : > { %v291_v34 = vadd.f32 %v290_v31, %v289_v32 }
  0x42   : > { %v236_v27 = vadd.f32 %v235_v23, %v234_v19 }
  0x43   : > { %v292_v37 = vrot.slane %v291_v34, 4 }
  0x44   : > { %v237_v30 = vrot.slane %v236_v27, 2 }
  0x45   : > { %v293_v39 = vadd.f32 %v292_v37, %v291_v34 }
  0x46   : > { %v238_v33 = vadd.f32 %v237_v30, %v236_v27 }
  0x47   : > { %v294_v41 = vrot.slane %v293_v39, 2 }
  0x48   : > { %v239_v35 = vrot.slane %v238_v33, 1 }
  0x49   : > { %v295_v42 = vadd.f32 %v294_v41, %v293_v39 }
  0x4a   : > { %v240_v38 = vadd.f32 %v239_v35, %v238_v33 }
  0x4c   : > { %v241_v40 = vadd.f32 %v240_v38, %v202_v36 }
  0x4e   : > { %243 = vst.msk [vmem:[%s743_s7] sm:$0x1] %vm242_vm2, %v241_v40 }
  0x4f   : > { %545 = shalt.err (!%p542_p8)
}
  0x50   : > { %441 = dma.vmem_to_hbm [thread:$0]  (%p711_p3), %s316_s23, 16, %s318_s24, %s301_s30   ;;  %v296_v43 = vrot.slane %v295_v42, 1  ;;  %v244_v44 = vld [vmem:[%s746_s8] sm:$0x1] }
  0x51   : > { %s328_s13 = sshll.u32 %s746_s8, 4  ;;  %s330_s7 = sshll.u32 %s326_s29, 4  ;;  %s329_s13 = int_to_ptr.vmem [resolvable:$true] %s328_s13  ;;  %s331_s7 = int_to_ptr.hbm [resolvable:$true] %s330_s7 }
  0x52   : > { %v297_v45 = vadd.f32 %v296_v43, %v295_v42  ;;  %s305_s27 = scalar_lea.sflag [#allocation5], %s732_s26  ;;  %s560_s28 = sshra.s32 %s331_s7, 4  ;;  %s561_s28 = int_to_ptr.hbm [resolvable:$true] %s560_s28 }
  0x53   : > { %s562_s3 = scalar_lea.hbm %s561_s28, 1  ;;  %s566_s24 = scalar_lea.hbm %s867_s2, 2 }
  0x54   : > { %v298_v46 = vadd.f32 %v297_v45, %v244_v44  ;;  %p563_p10 = scmp.ne.s32.totalorder %s561_s28, %s562_s3  ;;  %p567_p13 = scmp.lt.s32.totalorder %s561_s28, %s867_s2 }
  0x55   : > { %p568_p0 = scmp.lt.s32.totalorder %s566_s24, %s562_s3 }
  0x56   : > { %299 = vst.msk [vmem:[%s746_s8] sm:$0x1] %vm242_vm2, %v298_v46  ;;  %p564_p11 = pnand %p563_p10, %p711_p3 }
  0x57   : > { %p569_p1 = por %p568_p0, %p567_p13 }
  0x58   : > { %p565_p12 = pneg %p564_p11 }
  0x5a   : > { %p570_p2 = pnand %p569_p1, %p565_p12 }
  0x5c   : > { %573 = shalt.err (!%p570_p2)
}
  0x5d   : > { %442 = dma.vmem_to_hbm [thread:$0]  (%p711_p3), %s329_s13, 16, %s331_s7, %s305_s27  }
  0x5e PF: > { %p452_p4 = scmp.ge.s32.totalorder %s644_s16, 2  ;;  %s342_s26 = sand.u32 1, %s616_s9  }
  0x5f   : > { %s343_s8 = scalar_lea.sflag [#allocation3], %s342_s26 }
  0x60   : > { %p446_p5 = pnand %p452_p4, %p721_p9 }
  0x62   : > { %p447_p6 = pneg %p446_p5 }
  0x64   : > { %607 = dma.done.wait (%p447_p6), %s343_s8, 16  }
  0x65   : > { %609 = vsyncadd (%p447_p6), %s343_s8, 4294967280  ;;  %s352_s5 = scalar_lea.sflag [#allocation5], %s342_s26 }
  0x66   : > { %611 = dma.done.wait (%p447_p6), %s352_s5, 16  }
  0x67   : > { %613 = vsyncadd (%p447_p6), %s352_s5, 4294967280  ;;  %s19_s16 = sadd.s32 1, %s644_s16   ;;  %s870_s9 = smov %s620_s10 }
  0x68   : > { %p16_p7 = scmp.ge.s32.totalorder %s19_s16, 6   ;;  %s871_s10 = smov %s624_s11 }
  0x69   : > { %s872_s11 = smov %s729_s25  ;;  %s873_s12 = smov %s636_s14 }
  0x6a   : > { %s874_s13 = smov %s640_s15  ;;  %s875_s14 = smov %s878_s19 }
  0x6b   : > { %s876_s15 = smov %s882_s20  ;;  %18 = sbr.rel (!%p16_p7) target bundleno = 7 (0x7), region = 80 }
  0x70   :  { %357 = vsyncpa [#allocation3], 1 }
  0x71   :  { %359 = vsyncpa [#allocation3 + $0x1], 1 }
  0x72   :  { %360 = vsyncpa [#allocation5], 1 }
  0x73   :  { %362 = vsyncpa [#allocation5 + $0x1], 1 }

</bundles_post_ra>
